<compile_context>
chip_gen: v5e
topology: v5e:2x2
jax: 0.10.0
libtpu: 0.0.40
codegen_flags: <defaults>
</compile_context>

<pallas_src>
import jax
import jax.numpy as jnp
from jax.experimental import pallas as pl
from jax.experimental.pallas import tpu as pltpu


# ----------------------------- Pallas kernel --------------------------------

def _gather_rows(ids, table):
    """Embedding gather as one-hot @ table (MXU). `ids` is (T, 1) int32,
    `table` is a small VMEM-resident (V, D) block."""
    t = ids.shape[0]
    v = table.shape[0]
    col = jax.lax.broadcasted_iota(jnp.int32, (t, v), dimension=1)
    onehot = (col == ids).astype(table.dtype)        # built directly in table dtype
    return jnp.dot(onehot, table, preferred_element_type=jnp.float32)


def _fused_embedding_kernel(node_ids_ref, node_tab_ref,
                            edge_x_ref, w_ref, b_ref,
                            state_ids_ref, state_tab_ref,
                            node_out_ref, edge_out_ref, state_out_ref):
    # --- node embedding lookup (row tile of ids, resident table) -------------
    node_out_ref[...] = _gather_rows(
        node_ids_ref[...], node_tab_ref[...]).astype(node_out_ref.dtype)

    # --- edge MLP: lane-folded matmul (MXU, f32 acc) + bias + SiLU (VPU/EUP) -
    y = jnp.dot(edge_x_ref[...], w_ref[...], preferred_element_type=jnp.float32)
    y = y + b_ref[...]                                # (1, 128) sublane broadcast
    edge_out_ref[...] = (y * jax.nn.sigmoid(y)).astype(edge_out_ref.dtype)

    # --- state embedding lookup ----------------------------------------------
    state_out_ref[...] = _gather_rows(
        state_ids_ref[...], state_tab_ref[...]).astype(state_out_ref.dtype)


# ----------------------------- wrapper ---------------------------------------

def _round_up(x: int, m: int) -> int:
    return ((x + m - 1) // m) * m


def embedding_block_forward(params, node_attr, edge_attr, state_attr,
                            *, max_edge_rows_per_tile: int = 2048):
    """Mirrors EmbeddingBlock.forward (node/edge/state) with one pallas_call."""
    node_table = params["node_embedding"]
    state_table = params["state_embedding"]
    w = params["edge_w"].astype(jnp.float32)
    b = params["edge_b"].astype(jnp.float32)

    n_nodes = node_attr.shape[0]
    n_edges, k = edge_attr.shape
    n_state = state_attr.shape[0]
    vn, dn = node_table.shape
    vs, ds = state_table.shape
    d_edge = w.shape[1]

    # Lane-folding factor: fold `f` edge rows into one 128-lane row so the
    # edge-MLP matmul and its stores are lane-dense.
    f = 128 // d_edge if (d_edge < 128 and 128 % d_edge == 0) else 1

    # --- tile sizes (well under 32 MiB scoped-VMEM incl. double buffering) ---
    edges_per_tile = min(max_edge_rows_per_tile, _round_up(n_edges, 8 * f))
    edges_per_tile = _round_up(edges_per_tile, 8 * f)
    tfe = edges_per_tile // f                     # folded edge rows per tile
    g = pl.cdiv(n_edges, edges_per_tile)          # grid size (row tiles)
    e_pad = g * edges_per_tile

    tmn = _round_up(pl.cdiv(n_nodes, g), 8)       # node rows per tile
    n_pad = g * tmn
    tms = _round_up(pl.cdiv(n_state, g), 8)       # state rows per tile
    s_pad = g * tms

    # --- wrapper-side padding + lane folding (free HBM reshapes) -------------
    node_ids = jnp.pad(node_attr.astype(jnp.int32), (0, n_pad - n_nodes)).reshape(n_pad, 1)
    state_ids = jnp.pad(state_attr.astype(jnp.int32), (0, s_pad - n_state)).reshape(s_pad, 1)
    edge_x = jnp.pad(edge_attr.astype(jnp.float32), ((0, e_pad - n_edges), (0, 0)))
    edge_x = edge_x.reshape(e_pad // f, k * f)

    # Block-diagonal weight keeps folded rows independent: (k*f, d*f).
    if f > 1:
        w_block = jnp.zeros((k * f, d_edge * f), jnp.float32)
        for j in range(f):
            w_block = w_block.at[j * k:(j + 1) * k, j * d_edge:(j + 1) * d_edge].set(w)
        b_block = jnp.tile(b, f).reshape(1, d_edge * f)
    else:
        w_block = w
        b_block = b.reshape(1, d_edge)
    kf = k * f
    df = d_edge * f

    cost = pl.CostEstimate(
        flops=2 * (e_pad // f) * kf * df + 2 * n_pad * vn * dn + 2 * s_pad * vs * ds,
        transcendentals=(e_pad // f) * df,
        bytes_accessed=4 * (node_ids.size + node_table.size + edge_x.size
                            + w_block.size + b_block.size + state_ids.size
                            + state_table.size + n_pad * dn
                            + (e_pad // f) * df + s_pad * ds),
    )

    node_out, edge_out, state_out = pl.pallas_call(
        _fused_embedding_kernel,
        grid=(g,),
        in_specs=[
            pl.BlockSpec((tmn, 1), lambda i: (i, 0)),    # node ids   (row-tiled)
            pl.BlockSpec((vn, dn), lambda i: (0, 0)),    # node table (resident)
            pl.BlockSpec((tfe, kf), lambda i: (i, 0)),   # folded edge rows (row-tiled)
            pl.BlockSpec((kf, df), lambda i: (0, 0)),    # block-diag W (resident)
            pl.BlockSpec((1, df), lambda i: (0, 0)),     # bias (resident)
            pl.BlockSpec((tms, 1), lambda i: (i, 0)),    # state ids  (row-tiled)
            pl.BlockSpec((vs, ds), lambda i: (0, 0)),    # state table (resident)
        ],
        out_specs=(
            pl.BlockSpec((tmn, dn), lambda i: (i, 0)),
            pl.BlockSpec((tfe, df), lambda i: (i, 0)),
            pl.BlockSpec((tms, ds), lambda i: (i, 0)),
        ),
        out_shape=(
            jax.ShapeDtypeStruct((n_pad, dn), node_table.dtype),
            jax.ShapeDtypeStruct((e_pad // f, df), jnp.float32),
            jax.ShapeDtypeStruct((s_pad, ds), state_table.dtype),
        ),
        compiler_params=pltpu.CompilerParams(dimension_semantics=("parallel",)),
        cost_estimate=cost,
    )(node_ids, node_table, edge_x, w_block, b_block, state_ids, state_table)

    node_feat = node_out[:n_nodes]
    edge_feat = edge_out.reshape(e_pad, d_edge)[:n_edges]
    state_feat = state_out[:n_state]
    return node_feat, edge_feat, state_feat


# ----------------------------- demo / smoke test -----------------------------

if __name__ == "__main__":
    # Module hyper-parameters (small, consistent with EmbeddingBlock.__init__).
    degree_rbf = 8
    dim_node_embedding = 32
    dim_edge_embedding = 32
    ntypes_node = 16
    ntypes_state = 4
    dim_state_embedding = 16

    # Problem sizes.
    num_nodes = 8
    num_edges = 16
    num_graphs = 2

    key = jax.random.PRNGKey(0)
    k_nemb, k_semb, k_w, k_b, k_nid, k_edge, k_sid = jax.random.split(key, 7)

    params = {
        "node_embedding": jax.random.normal(
            k_nemb, (ntypes_node, dim_node_embedding), dtype=jnp.float32),
        "state_embedding": jax.random.normal(
            k_semb, (ntypes_state, dim_state_embedding), dtype=jnp.float32),
        "edge_w": jax.random.uniform(
            k_w, (degree_rbf, dim_edge_embedding), dtype=jnp.float32,
            minval=-0.3, maxval=0.3),
        "edge_b": jax.random.uniform(
            k_b, (dim_edge_embedding,), dtype=jnp.float32,
            minval=-0.1, maxval=0.1),
    }

    node_attr = jax.random.randint(k_nid, (num_nodes,), 0, ntypes_node, dtype=jnp.int32)
    edge_attr = jax.random.normal(k_edge, (num_edges, degree_rbf), dtype=jnp.float32)
    state_attr = jax.random.randint(k_sid, (num_graphs,), 0, ntypes_state, dtype=jnp.int32)

    node_feat, edge_feat, state_feat = embedding_block_forward(
        params, node_attr, edge_attr, state_attr)
    jax.block_until_ready((node_feat, edge_feat, state_feat))

    # Reference check (plain JAX).
    ref_node = params["node_embedding"][node_attr]
    ref_edge = jax.nn.silu(edge_attr @ params["edge_w"] + params["edge_b"])
    ref_state = params["state_embedding"][state_attr]

    assert node_feat.shape == (num_nodes, dim_node_embedding)
    assert edge_feat.shape == (num_edges, dim_edge_embedding)
    assert state_feat.shape == (num_graphs, dim_state_embedding)
    assert jnp.allclose(node_feat, ref_node, atol=1e-5)
    assert jnp.allclose(edge_feat, ref_edge, atol=1e-5)
    assert jnp.allclose(state_feat, ref_state, atol=1e-5)

    print("KERNEL_OK")
</pallas_src>

<mosaic_0001>
module attributes {stable_mosaic.version = 11 : i64} {
  func.func @_fused_embedding_kernel(%arg0: i32, %arg1: memref<8x1xi32, #tpu.memory_space<vmem>>, %arg2: memref<16x32xf32, #tpu.memory_space<vmem>>, %arg3: memref<8x32xf32, #tpu.memory_space<vmem>>, %arg4: memref<32x128xf32, #tpu.memory_space<vmem>>, %arg5: memref<1x128xf32, #tpu.memory_space<vmem>>, %arg6: memref<8x1xi32, #tpu.memory_space<vmem>>, %arg7: memref<4x16xf32, #tpu.memory_space<vmem>>, %arg8: memref<8x32xf32, #tpu.memory_space<vmem>>, %arg9: memref<8x128xf32, #tpu.memory_space<vmem>>, %arg10: memref<8x16xf32, #tpu.memory_space<vmem>>) attributes {dimension_semantics = [#tpu.dimension_semantics<parallel>], iteration_bounds = array<i64: 1>, scalar_prefetch = 0 : i64, scratch_operands = 0 : i64, tpu.core_type = #tpu.core_type<tc>, window_params = [{transform_indices = @transform_0, window_bounds = array<i64: 8, 1>}, {pipeline_mode = #tpu.pipeline_mode<synchronous>, transform_indices = @transform_1, window_bounds = array<i64: 16, 32>}, {transform_indices = @transform_2, window_bounds = array<i64: 8, 32>}, {pipeline_mode = #tpu.pipeline_mode<synchronous>, transform_indices = @transform_3, window_bounds = array<i64: 32, 128>}, {pipeline_mode = #tpu.pipeline_mode<synchronous>, transform_indices = @transform_4, window_bounds = array<i64: 1, 128>}, {transform_indices = @transform_5, window_bounds = array<i64: 8, 1>}, {pipeline_mode = #tpu.pipeline_mode<synchronous>, transform_indices = @transform_6, window_bounds = array<i64: 4, 16>}, {transform_indices = @transform_7, window_bounds = array<i64: 8, 32>}, {transform_indices = @transform_8, window_bounds = array<i64: 8, 128>}, {transform_indices = @transform_9, window_bounds = array<i64: 8, 16>}]} {
    %c0 = arith.constant 0 : index
    %c0_0 = arith.constant 0 : index
    %0 = vector.load %arg1[%c0, %c0_0] : memref<8x1xi32, #tpu.memory_space<vmem>>, vector<8x1xi32>
    %c0_1 = arith.constant 0 : index
    %c0_2 = arith.constant 0 : index
    %1 = vector.load %arg2[%c0_1, %c0_2] : memref<16x32xf32, #tpu.memory_space<vmem>>, vector<16x32xf32>
    %2 = tpu.iota {dimensions = array<i32: 1>} : vector<8x16xi32>
    %3 = vector.broadcast %0 : vector<8x1xi32> to vector<8x16xi32>
    %4 = arith.cmpi eq, %2, %3 : vector<8x16xi32>
    %5 = arith.extui %4 : vector<8x16xi1> to vector<8x16xi32>
    %6 = arith.sitofp %5 : vector<8x16xi32> to vector<8x16xf32>
    %cst = arith.constant dense<0.000000e+00> : vector<8x32xf32>
    %7 = tpu.matmul %6, %1, %cst {dimension_numbers = #tpu.dot_dimension_numbers<[1], [0], [0], [1], [0, 0, 1, 1], [], []>} : vector<8x16xf32>, vector<16x32xf32>, vector<8x32xf32> -> vector<8x32xf32>
    %c0_3 = arith.constant 0 : index
    %c0_4 = arith.constant 0 : index
    %8 = vector.load %arg8[%c0_3, %c0_4] : memref<8x32xf32, #tpu.memory_space<vmem>>, vector<8x32xf32>
    tpu.vector_store %arg8[%c0_3, %c0_4], %7 {strides = array<i32>} : memref<8x32xf32, #tpu.memory_space<vmem>>, vector<8x32xf32>,
    %c0_5 = arith.constant 0 : index
    %c0_6 = arith.constant 0 : index
    %9 = vector.load %arg3[%c0_5, %c0_6] : memref<8x32xf32, #tpu.memory_space<vmem>>, vector<8x32xf32>
    %c0_7 = arith.constant 0 : index
    %c0_8 = arith.constant 0 : index
    %10 = vector.load %arg4[%c0_7, %c0_8] : memref<32x128xf32, #tpu.memory_space<vmem>>, vector<32x128xf32>
    %cst_9 = arith.constant dense<0.000000e+00> : vector<8x128xf32>
    %11 = tpu.matmul %9, %10, %cst_9 {dimension_numbers = #tpu.dot_dimension_numbers<[1], [0], [0], [1], [0, 0, 1, 1], [], []>} : vector<8x32xf32>, vector<32x128xf32>, vector<8x128xf32> -> vector<8x128xf32>
    %c0_10 = arith.constant 0 : index
    %c0_11 = arith.constant 0 : index
    %12 = vector.load %arg5[%c0_10, %c0_11] : memref<1x128xf32, #tpu.memory_space<vmem>>, vector<1x128xf32>
    %13 = vector.broadcast %12 : vector<1x128xf32> to vector<8x128xf32>
    %14 = arith.addf %11, %13 : vector<8x128xf32>
    %15 = arith.negf %14 : vector<8x128xf32>
    %16 = math.exp %15 : vector<8x128xf32>
    %cst_12 = arith.constant 1.000000e+00 : f32
    %17 = vector.broadcast %cst_12 : f32 to vector<8x128xf32>
    %18 = arith.addf %17, %16 : vector<8x128xf32>
    %19 = arith.divf %17, %18 : vector<8x128xf32>
    %20 = arith.mulf %14, %19 : vector<8x128xf32>
    %c0_13 = arith.constant 0 : index
    %c0_14 = arith.constant 0 : index
    %21 = vector.load %arg9[%c0_13, %c0_14] : memref<8x128xf32, #tpu.memory_space<vmem>>, vector<8x128xf32>
    tpu.vector_store %arg9[%c0_13, %c0_14], %20 {strides = array<i32>} : memref<8x128xf32, #tpu.memory_space<vmem>>, vector<8x128xf32>,
    %c0_15 = arith.constant 0 : index
    %c0_16 = arith.constant 0 : index
    %22 = vector.load %arg6[%c0_15, %c0_16] : memref<8x1xi32, #tpu.memory_space<vmem>>, vector<8x1xi32>
    %c0_17 = arith.constant 0 : index
    %c0_18 = arith.constant 0 : index
    %23 = vector.load %arg7[%c0_17, %c0_18] : memref<4x16xf32, #tpu.memory_space<vmem>>, vector<4x16xf32>
    %24 = tpu.iota {dimensions = array<i32: 1>} : vector<8x4xi32>
    %25 = vector.broadcast %22 : vector<8x1xi32> to vector<8x4xi32>
    %26 = arith.cmpi eq, %24, %25 : vector<8x4xi32>
    %27 = arith.extui %26 : vector<8x4xi1> to vector<8x4xi32>
    %28 = arith.sitofp %27 : vector<8x4xi32> to vector<8x4xf32>
    %cst_19 = arith.constant dense<0.000000e+00> : vector<8x16xf32>
    %29 = tpu.matmul %28, %23, %cst_19 {dimension_numbers = #tpu.dot_dimension_numbers<[1], [0], [0], [1], [0, 0, 1, 1], [], []>} : vector<8x4xf32>, vector<4x16xf32>, vector<8x16xf32> -> vector<8x16xf32>
    %c0_20 = arith.constant 0 : index
    %c0_21 = arith.constant 0 : index
    %30 = vector.load %arg10[%c0_20, %c0_21] : memref<8x16xf32, #tpu.memory_space<vmem>>, vector<8x16xf32>
    tpu.vector_store %arg10[%c0_20, %c0_21], %29 {strides = array<i32>} : memref<8x16xf32, #tpu.memory_space<vmem>>, vector<8x16xf32>,
    return
  }
  func.func @transform_0(%arg0: i32) -> (i32, i32) {
    %c0_i32 = arith.constant 0 : i32
    %c0_i32_0 = arith.constant 0 : i32
    return %arg0, %c0_i32 : i32, i32
  }
  func.func @transform_1(%arg0: i32) -> (i32, i32) {
    %c0_i32 = arith.constant 0 : i32
    %c0_i32_0 = arith.constant 0 : i32
    %c0_i32_1 = arith.constant 0 : i32
    return %c0_i32, %c0_i32_0 : i32, i32
  }
  func.func @transform_2(%arg0: i32) -> (i32, i32) {
    %c0_i32 = arith.constant 0 : i32
    %c0_i32_0 = arith.constant 0 : i32
    return %arg0, %c0_i32 : i32, i32
  }
  func.func @transform_3(%arg0: i32) -> (i32, i32) {
    %c0_i32 = arith.constant 0 : i32
    %c0_i32_0 = arith.constant 0 : i32
    %c0_i32_1 = arith.constant 0 : i32
    return %c0_i32, %c0_i32_0 : i32, i32
  }
  func.func @transform_4(%arg0: i32) -> (i32, i32) {
    %c0_i32 = arith.constant 0 : i32
    %c0_i32_0 = arith.constant 0 : i32
    %c0_i32_1 = arith.constant 0 : i32
    return %c0_i32, %c0_i32_0 : i32, i32
  }
  func.func @transform_5(%arg0: i32) -> (i32, i32) {
    %c0_i32 = arith.constant 0 : i32
    %c0_i32_0 = arith.constant 0 : i32
    return %arg0, %c0_i32 : i32, i32
  }
  func.func @transform_6(%arg0: i32) -> (i32, i32) {
    %c0_i32 = arith.constant 0 : i32
    %c0_i32_0 = arith.constant 0 : i32
    %c0_i32_1 = arith.constant 0 : i32
    return %c0_i32, %c0_i32_0 : i32, i32
  }
  func.func @transform_7(%arg0: i32) -> (i32, i32) {
    %c0_i32 = arith.constant 0 : i32
    %c0_i32_0 = arith.constant 0 : i32
    return %arg0, %c0_i32 : i32, i32
  }
  func.func @transform_8(%arg0: i32) -> (i32, i32) {
    %c0_i32 = arith.constant 0 : i32
    %c0_i32_0 = arith.constant 0 : i32
    return %arg0, %c0_i32 : i32, i32
  }
  func.func @transform_9(%arg0: i32) -> (i32, i32) {
    %c0_i32 = arith.constant 0 : i32
    %c0_i32_0 = arith.constant 0 : i32
    return %arg0, %c0_i32 : i32, i32
  }
}

</mosaic_0001>

<bundles_post_ra>
// kernel: tpu_custom_call.1
= control target key start
LH: loop header
LB: loop body
LE: loop exit
PB: predicated region body
PF: predicated region fallthrough
CT: control target
= control target key end

     0   :  { %15 = vsyncpa [#allocation3], 0  ;;  %s483_s0 = inlined_call_operand.vmem [shape: s32[8,1], index: 0, kind: input, shape index: {}]   ;;  %s484_s1 = inlined_call_operand.vmem [shape: f32[16,32], index: 1, kind: input, shape index: {}]   ;;  %s485_s2 = inlined_call_operand.hbm [shape: f32[8,32], index: 2, kind: input, shape index: {}]   ;;  %s486_s3 = inlined_call_operand.hbm [shape: f32[32,128], index: 3, kind: input, shape index: {}]   ;;  %s487_s4 = inlined_call_operand.vmem [shape: f32[1,128], index: 4, kind: input, shape index: {}]   ;;  %s488_s5 = inlined_call_operand.vmem [shape: s32[8,1], index: 5, kind: input, shape index: {}]   ;;  %s489_s6 = inlined_call_operand.vmem [shape: f32[4,16], index: 6, kind: input, shape index: {}]   ;;  %s490_s7 = inlined_call_operand.hbm [shape: f32[8,32], index: 7, kind: output, shape index: {0}]   ;;  %s491_s8 = inlined_call_operand.hbm [shape: f32[8,128], index: 8, kind: output, shape index: {1}]   ;;  %s492_s9 = inlined_call_operand.hbm [shape: f32[8,16], index: 9, kind: output, shape index: {2}]  }
   0x1   :  { %16 = vsyncpa [#allocation6], 0 }
   0x2   :  { %17 = vsyncpa [#allocation4], 0 }
   0x3   :  { %18 = vsyncpa [#allocation9], 0  ;;  %s28_s11 = sshll.u32 %s485_s2, 4  ;;  %s387_s12 = smov [#allocation2]   ;;  %s29_s11 = int_to_ptr.hbm [resolvable:$true] %s28_s11 }
   0x4   :  { %s30_s13 = sshll.u32 %s387_s12, 4  ;;  %s38_s16 = sshll.u32 %s486_s3, 4  ;;  %s31_s13 = int_to_ptr.vmem [resolvable:$true] %s30_s13  ;;  %s39_s16 = int_to_ptr.hbm [resolvable:$true] %s38_s16 }
   0x5   :  { %33 = dma.hbm_to_vmem [thread:$0]  %s29_s11, 128, %s31_s13, [#allocation3]  }
   0x6   :  { %s388_s17 = smov [#allocation5]   ;;  %s389_s19 = smov 128  }
   0x7   :  { %s40_s18 = sshll.u32 %s388_s17, 4  ;;  %s390_s20 = smov 8   ;;  %s41_s18 = int_to_ptr.vmem [resolvable:$true] %s40_s18 }
   0x8   :  { %46 = dma.hbm_to_vmem [thread:$0]  %s39_s16, 512, %s41_s18, [#allocation6], %s389_s19, %s389_s19, %s390_s20  }
   0x9   :  { %379 = dma.done.wait [#allocation3], 128  }
   0xa   :  { %380 = vsyncadd [#allocation3], 4294967168 }
   0xb   :  { %381 = dma.done.wait [#allocation6], 512  }
   0xc   :  { %382 = vsyncadd [#allocation6], 4294966784  ;;  %v391_v0 = vmov 0   ;;  %v151_v1 = vld [vmem:[%s488_s5] sm:$0xff]  ;;  %v101_v3 = vld [vmem:[#allocation5 + $0x10] sm:$0xff]  ;;  %vm96_vm0 = vcmask 261120   ;;  %v64_v11 = vlaneseq }
   0xd   :  { %253 = vset.pattern.permute.xlu0 %v391_v0  ;;  %v102_v2 = vld [vmem:[#allocation5 + $0x18] sm:$0xff]  ;;  %v100_v4 = vld [vmem:[#allocation5 + $0x8] sm:$0xff]  ;;  %v99_v5 = vld [vmem:[#allocation5] sm:$0xff]  ;;  %vm163_vm1 = vcmask 1043456   ;;  %vm159_vm2 = vcmask 31744   ;;  %v392_v14 = vmov 0.0  }
   0xe   :  { %154 = vperm.xlu0 %253, %v151_v1   ;;  %122 = vmatpush.msra.mxu1 %v102_v2  ;;  %v98_v6 = vld [vmem:[#allocation2] sm:$0xff]  ;;  %v63_v9 = vld [vmem:[%s484_s1 + $0x8] sm:$0xff]  ;;  %v65_v12 = vand.u32 127, %v64_v11  ;;  %vm72_vm4 = vcmask 130048   ;;  %s206_s30 = sshll.u32 %s491_s8, 4  ;;  %s394_s10 = smov [#allocation10]   ;;  %s207_s30 = int_to_ptr.hbm [resolvable:$true] %s206_s30 }
   0xf   :  { %v61_v7 = vld [vmem:[%s483_s0] sm:$0xff]  ;;  %90 = vmatpush.msra.mxu0 %v63_v9  ;;  %s215_s11 = sshll.u32 %s394_s10, 4  ;;  %s217_s14 = sshll.u32 %s492_s9, 4  ;;  %s216_s11 = int_to_ptr.vmem [resolvable:$true] %s215_s11  ;;  %s218_s14 = int_to_ptr.hbm [resolvable:$true] %s217_s14 }
  0x10   :  { %123 = vmatpush.msra.mxu1 %v101_v3  ;;  %v152_v8 = vld [vmem:[%s489_s6] sm:$0xf]  ;;  %s395_s15 = smov [#allocation7]   ;;  %s195_s19 = sshll.u32 %s490_s7, 4  ;;  %s196_s19 = int_to_ptr.hbm [resolvable:$true] %s195_s19 }
  0x11   :  { %242 = vmatpush.msk.msra.mxu2 %vm163_vm1, %v152_v8  ;;  %v62_v10 = vld [vmem:[%s484_s1] sm:$0xff]  ;;  %s393_s1 = smov [#allocation8]   ;;  %s193_s16 = sshll.u32 %s395_s15, 4  ;;  %s194_s16 = int_to_ptr.vmem [resolvable:$true] %s193_s16 }
  0x12   :  { %124 = vmatpush.msra.mxu1 %v100_v4  ;;  %91 = vmatpush.msra.mxu0 %v62_v10  ;;  %v254_v18 = vld [vmem:[%s487_s4] ss:$0 sm:$0xff]  ;;  %s204_s4 = sshll.u32 %s393_s1, 4  ;;  %s205_s4 = int_to_ptr.vmem [resolvable:$true] %s204_s4 }
  0x14   :  { %125 = vmatpush.msra.mxu1 %v99_v5 }
  0x15   :  { %239 = vmatmul.msk.f32.vlgmr.msra.gmra.mxu1 %vm96_vm0, %v98_v6 }
  0x16   :  { %67 = vperm.xlu0 %253, %v61_v7  }
  0x80   :  { %v155_v13 = vpop.permute.xlu0 %154 }
  0x81   :  { %vm156_vm3 = vcmp.eq.s32.totalorder %v65_v12, %v155_v13 }
  0x82   :  { %v241_v15 = vsel %vm156_vm3, 1.0, %v392_v14 }
  0x83   :  { %243 = vmatmul.msk.f32.vlgmr.msra.gmra.mxu2 %vm159_vm2, %v241_v15 }
  0x88   :  { %v68_v16 = vpop.permute.xlu0 %67 }
  0x89   :  { %vm69_vm5 = vcmp.eq.s32.totalorder %v65_v12, %v68_v16 }
  0x8a   :  { %v237_v17 = vsel %vm69_vm5, 1.0, %v392_v14 }
  0x8b   :  { %238 = vmatmul.msk.f32.vlgmr.msra.gmra.mxu0 %vm72_vm4, %v237_v17 }
  0x92   :  { %v127_v19 = vpop.f32.mrf.mxu1 }
  0x93   :  { %v128_v20 = vadd.f32 %v254_v18, %v127_v19 }
  0x95   :  { %v240_v21 = vmul.f32 -1.442695, %v128_v20 }
  0x97   :  { %255 = vpow2.f32 %v240_v21 }
  0x9d   :  { %v256_v22 = vpop.eup %255 }
  0x9e   :  { %v133_v23 = vadd.f32 1.0, %v256_v22 }
  0xa0   :  { %257 = vrcp.f32 %v133_v23  ;;  %v145_v26 = vand.u32 2147483648, %v133_v23  ;;  %vm139_vm6 = vweird.f32 %v133_v23  ;;  %v143_v28 = vand.u32 2147483647, %v133_v23 }
  0xa2   :  { %v146_v30 = vor.u32 1.1754944e-38, %v145_v26  ;;  %vm144_vm9 = vcmp.eq.f32.partialorder %v143_v28, 8.507059e+37 }
  0xa6   :  { %v258_v24 = vpop.eup %257 }
  0xa7   :  { %v135_v25 = vmul.f32 %v258_v24, %v133_v23  ;;  %vm140_vm7 = vweird.f32 %v258_v24 }
  0xa8   :  { %vm141_vm8 = vmor %vm139_vm6, %vm140_vm7 }
  0xa9   :  { %v136_v27 = vsub.f32 1.0, %v135_v25 }
  0xab   :  { %v137_v29 = vmul.f32 %v258_v24, %v136_v27 }
  0xad   :  { %v138_v31 = vadd.f32 %v258_v24, %v137_v29 }
  0xaf   :  { %v142_v32 = vsel %vm141_vm8, %v258_v24, %v138_v31 }
  0xb0   :  { %v147_v33 = vsel %vm144_vm9, %v146_v30, %v142_v32 }
  0xb1   :  { %v149_v34 = vmul.f32 %v147_v33, %v128_v20 }
  0xb3   :  { %150 = vst [vmem:[#allocation8] sm:$0xff] %v149_v34 }
  0xb4   :  { %209 = dma.vmem_to_hbm [thread:$0]  %s205_s4, 128, %s207_s30, [#allocation9]  }
 0x106   :  { %v184_v35 = vpop.f32.mrf.mxu2 }
 0x107   :  { %187 = vst.msk [vmem:[#allocation10] sm:$0xff] %vm72_vm4, %v184_v35 }
 0x108   :  { %v93_v36 = vpop.f32.mrf.mxu0  ;;  %220 = dma.vmem_to_hbm [thread:$0]  %s216_s11, 128, %s218_s14, [#allocation9]  }
 0x109   :  { %97 = vst.msk [vmem:[#allocation7] sm:$0xff] %vm96_vm0, %v93_v36 }
 0x10a   :  { %198 = dma.vmem_to_hbm [thread:$0]  %s194_s16, 128, %s196_s19, [#allocation4]  }
 0x10b   :  { %383 = dma.done.wait [#allocation4], 128  }
 0x10c   :  { %384 = vsyncadd [#allocation4], 4294967168 }
 0x10d   :  { %385 = dma.done.wait [#allocation9], 256  }
 0x10e   :  { %386 = vsyncadd [#allocation9], 4294967040 }
 0x10f   :  { %233 = vsyncpa [#allocation3], 1 }
 0x110   :  { %234 = vsyncpa [#allocation6], 1 }
 0x111   :  { %235 = vsyncpa [#allocation4], 1 }
 0x112   :  { %236 = vsyncpa [#allocation9], 1 }

</bundles_post_ra>
